<compile_context>
chip_gen: v5e
topology: v5e:2x2
jax: 0.10.0
libtpu: 0.0.40
codegen_flags: <defaults>
</compile_context>

<pallas_src>
import math

import jax
import jax.numpy as jnp
from jax.experimental import pallas as pl
from jax.experimental.pallas import tpu as pltpu

# ---- Module hyper-parameters (match PyTorch __init__ defaults) --------------
INPUT_S = 1                      # kernel assumes input_s == 1 (module default)
ACTION_S = 2
HIDDEN = 56
LEARN_STD = True
MAX_ANGLE = math.pi
OUT_DIM = ACTION_S * 2 if LEARN_STD else ACTION_S

# ---- Padded, TPU-friendly shapes --------------------------------------------
OUT_PAD = 8      # fused output dim padded to one sublane group (4 -> 8)
LANE = 128       # lane width; batch rides the lane dimension
MAX_TB = 2048    # max batch tile (lanes); 8 x 2048 f32 out block = 64 KiB


def _round_up(n, m):
    return ((n + m - 1) // m) * m


def _choose_tiling(B):
    """Pick a lane-aligned batch tile.

    Guarantees: TB is a multiple of 128 (lane-dense blocks), TB <= MAX_TB,
    and the grid has >= 2 steps whenever B > 128 so the 'parallel' axis can
    shard across both v7x TensorCores.
    """
    nblk = pl.cdiv(max(B, 1), LANE)          # number of 128-wide lane blocks
    max_blocks = MAX_TB // LANE
    if nblk <= 1:
        tb_blocks, steps = 1, 1
    else:
        steps = max(2, pl.cdiv(nblk, max_blocks))
        tb_blocks = pl.cdiv(nblk, steps)
    TB = tb_blocks * LANE
    Bp = _round_up(B, TB)
    return TB, Bp, Bp // TB


# ---- Pallas kernel -----------------------------------------------------------
def actor_fwd_kernel(x_ref, v_ref, c_ref, out_ref):
    # Fused affine map. INPUT_S == 1, so the contraction is a broadcast
    # multiply on the VPU: (8, 1) * (1, TB) + (8, 1) -> (8, TB).
    x = x_ref[...]                                   # (1, TB), batch on lanes
    out = v_ref[...] * x + c_ref[...]                # (8, TB)

    # tanh(mu) * max_angle only on the ACTION_S mu rows (sublane mask over 8
    # rows); log_std rows and zero padding pass through untouched.
    row = jax.lax.broadcasted_iota(jnp.int32, out.shape, 0)
    out = jnp.where(row < ACTION_S, jnp.tanh(out) * MAX_ANGLE, out)

    # Lane-dense (8, TB) store -> one narrow, unmasked output DMA per step.
    out_ref[...] = out


# ---- Parameter fusion (done once, outside the per-call path) ----------------
def fuse_and_pad_params(w1, b1, w2, b2):
    """w1:(1,H), b1:(1,H), w2:(H,OUT_DIM), b2:(1,OUT_DIM)  [stored as W^T].

    Returns v_p:(OUT_PAD,1), c_p:(OUT_PAD,1) with zero padding on unused rows.
    """
    v = w1 @ w2                      # (INPUT_S, OUT_DIM) = (1, 4)
    c = b1 @ w2 + b2                 # (1, OUT_DIM)       = (1, 4)
    v_p = jnp.zeros((OUT_PAD, INPUT_S), jnp.float32).at[:OUT_DIM, :].set(v.T)
    c_p = jnp.zeros((OUT_PAD, 1), jnp.float32).at[:OUT_DIM, :].set(c.T)
    return v_p, c_p


# ---- Forward wrapper ---------------------------------------------------------
def actor_forward(x, v_p, c_p):
    """x: (B, 1) f32; v_p/c_p: pre-fused padded params from fuse_and_pad_params.
    Returns (tanh(mu)*max_angle, log_std), each (B, ACTION_S)."""
    B = x.shape[0]
    TB, Bp, grid = _choose_tiling(B)

    # Batch onto the lane dimension: (B, 1) -> (1, Bp).
    xt = jnp.pad(x.T, ((0, 0), (0, Bp - B)))

    out = pl.pallas_call(
        actor_fwd_kernel,
        out_shape=jax.ShapeDtypeStruct((OUT_PAD, Bp), jnp.float32),
        grid_spec=pl.GridSpec(
            grid=(grid,),
            in_specs=[
                pl.BlockSpec((INPUT_S, TB), lambda i: (0, i)),    # x: lane-tiled batch
                pl.BlockSpec((OUT_PAD, INPUT_S), lambda i: (0, 0)),  # fused weight (resident)
                pl.BlockSpec((OUT_PAD, 1), lambda i: (0, 0)),        # fused bias (resident)
            ],
            out_specs=pl.BlockSpec((OUT_PAD, TB), lambda i: (0, i)),
        ),
        compiler_params=pltpu.CompilerParams(
            dimension_semantics=("parallel",),   # shards across v7x's 2 TCs when grid >= 2
        ),
    )(xt, v_p, c_p)

    out_t = out[:OUT_DIM, :B].T                  # (B, OUT_DIM): 32 B/row read-back
    if LEARN_STD:
        mu = out_t[:, :ACTION_S]
        log_std = out_t[:, ACTION_S:]
    else:
        mu = out_t
        log_std = jnp.zeros_like(mu)
    return mu, log_std


actor_forward_jit = jax.jit(actor_forward)


# ---- Deterministic parameter init (mimics nn.Linear U(-1/sqrt(fan_in), .)) ---
def init_params(key):
    k1, k2, k3, k4 = jax.random.split(key, 4)
    bound1 = 1.0 / math.sqrt(INPUT_S)
    bound2 = 1.0 / math.sqrt(HIDDEN)
    # Weights stored as (in_features, out_features) == W^T of the PyTorch layout.
    w1 = jax.random.uniform(k1, (INPUT_S, HIDDEN), jnp.float32, -bound1, bound1)
    b1 = jax.random.uniform(k2, (1, HIDDEN), jnp.float32, -bound1, bound1)
    w2 = jax.random.uniform(k3, (HIDDEN, OUT_DIM), jnp.float32, -bound2, bound2)
    b2 = jax.random.uniform(k4, (1, OUT_DIM), jnp.float32, -bound2, bound2)
    return w1, b1, w2, b2


def reference_forward(x, w1, b1, w2, b2):
    # Un-fused two-layer reference (matches the PyTorch forward exactly).
    h = x @ w1 + b1
    out = h @ w2 + b2
    mu = out[:, :ACTION_S]
    log_std = out[:, ACTION_S:]
    return jnp.tanh(mu) * MAX_ANGLE, log_std


# TODO(synk): optimizer / update / ActionGrad_update / computeAction sampling are
# training-time utilities, not part of the forward pass, and are not implemented.

if __name__ == "__main__":
    key = jax.random.PRNGKey(0)
    k_x, k_p = jax.random.split(key)
    w1, b1, w2, b2 = init_params(k_p)

    # Fuse + pad the parameters once (not in the per-call path).
    v_p, c_p = fuse_and_pad_params(w1, b1, w2, b2)
    v_p, c_p = jax.block_until_ready((v_p, c_p))

    # Small, module-consistent batches; also exercise padding (B=5) and the
    # multi-step grid path (B=300 -> TB=256, grid=2).
    for B in (8, 5, 300):
        x = jax.random.normal(jax.random.fold_in(k_x, B), (B, INPUT_S), dtype=jnp.float32)

        mu, log_std = actor_forward_jit(x, v_p, c_p)
        jax.block_until_ready((mu, log_std))

        mu_ref, log_std_ref = reference_forward(x, w1, b1, w2, b2)
        assert mu.shape == (B, ACTION_S) and log_std.shape == (B, ACTION_S)
        assert jnp.allclose(mu, mu_ref, atol=1e-5, rtol=1e-4)
        assert jnp.allclose(log_std, log_std_ref, atol=1e-5, rtol=1e-4)

    print("KERNEL_OK")
</pallas_src>

<mosaic_0001>
module attributes {stable_mosaic.version = 11 : i64} {
  func.func @actor_fwd_kernel(%arg0: i32, %arg1: memref<1x128xf32, #tpu.memory_space<vmem>>, %arg2: memref<8x1xf32, #tpu.memory_space<vmem>>, %arg3: memref<8x1xf32, #tpu.memory_space<vmem>>, %arg4: memref<8x128xf32, #tpu.memory_space<vmem>>) attributes {dimension_semantics = [#tpu.dimension_semantics<parallel>], iteration_bounds = array<i64: 1>, scalar_prefetch = 0 : i64, scratch_operands = 0 : i64, tpu.core_type = #tpu.core_type<tc>, window_params = [{transform_indices = @transform_0, window_bounds = array<i64: 1, 128>}, {pipeline_mode = #tpu.pipeline_mode<synchronous>, transform_indices = @transform_1, window_bounds = array<i64: 8, 1>}, {pipeline_mode = #tpu.pipeline_mode<synchronous>, transform_indices = @transform_2, window_bounds = array<i64: 8, 1>}, {transform_indices = @transform_3, window_bounds = array<i64: 8, 128>}]} {
    %c0 = arith.constant 0 : index
    %c0_0 = arith.constant 0 : index
    %0 = vector.load %arg1[%c0, %c0_0] : memref<1x128xf32, #tpu.memory_space<vmem>>, vector<1x128xf32>
    %c0_1 = arith.constant 0 : index
    %c0_2 = arith.constant 0 : index
    %1 = vector.load %arg2[%c0_1, %c0_2] : memref<8x1xf32, #tpu.memory_space<vmem>>, vector<8x1xf32>
    %2 = vector.broadcast %1 : vector<8x1xf32> to vector<8x128xf32>
    %3 = vector.broadcast %0 : vector<1x128xf32> to vector<8x128xf32>
    %4 = arith.mulf %2, %3 : vector<8x128xf32>
    %c0_3 = arith.constant 0 : index
    %c0_4 = arith.constant 0 : index
    %5 = vector.load %arg3[%c0_3, %c0_4] : memref<8x1xf32, #tpu.memory_space<vmem>>, vector<8x1xf32>
    %6 = vector.broadcast %5 : vector<8x1xf32> to vector<8x128xf32>
    %7 = arith.addf %4, %6 : vector<8x128xf32>
    %8 = tpu.iota {dimensions = array<i32: 0>} : vector<8x128xi32>
    %c2_i32 = arith.constant 2 : i32
    %9 = vector.broadcast %c2_i32 : i32 to vector<8x128xi32>
    %10 = arith.cmpi slt, %8, %9 : vector<8x128xi32>
    %11 = math.tanh %7 : vector<8x128xf32>
    %cst = arith.constant 3.14159274 : f32
    %12 = vector.broadcast %cst : f32 to vector<8x128xf32>
    %13 = arith.mulf %11, %12 : vector<8x128xf32>
    %14 = arith.select %10, %13, %7 : vector<8x128xi1>, vector<8x128xf32>
    %c0_5 = arith.constant 0 : index
    %c0_6 = arith.constant 0 : index
    %15 = vector.load %arg4[%c0_5, %c0_6] : memref<8x128xf32, #tpu.memory_space<vmem>>, vector<8x128xf32>
    tpu.vector_store %arg4[%c0_5, %c0_6], %14 {strides = array<i32>} : memref<8x128xf32, #tpu.memory_space<vmem>>, vector<8x128xf32>,
    return
  }
  func.func @transform_0(%arg0: i32) -> (i32, i32) {
    %c0_i32 = arith.constant 0 : i32
    %c0_i32_0 = arith.constant 0 : i32
    return %c0_i32, %arg0 : i32, i32
  }
  func.func @transform_1(%arg0: i32) -> (i32, i32) {
    %c0_i32 = arith.constant 0 : i32
    %c0_i32_0 = arith.constant 0 : i32
    %c0_i32_1 = arith.constant 0 : i32
    return %c0_i32, %c0_i32_0 : i32, i32
  }
  func.func @transform_2(%arg0: i32) -> (i32, i32) {
    %c0_i32 = arith.constant 0 : i32
    %c0_i32_0 = arith.constant 0 : i32
    %c0_i32_1 = arith.constant 0 : i32
    return %c0_i32, %c0_i32_0 : i32, i32
  }
  func.func @transform_3(%arg0: i32) -> (i32, i32) {
    %c0_i32 = arith.constant 0 : i32
    %c0_i32_0 = arith.constant 0 : i32
    return %c0_i32, %arg0 : i32, i32
  }
}

</mosaic_0001>

<bundles_post_ra>
// kernel: actor_forward.1
= control target key start
LH: loop header
LB: loop body
LE: loop exit
PB: predicated region body
PF: predicated region fallthrough
CT: control target
= control target key end

     0   :  { %v48_v0 = vmov 0   ;;  %v32_v7 = vlaneseq  ;;  %s81_s1 = inlined_call_operand.vmem [shape: f32[8,1], index: 1, kind: input, shape index: {}]   ;;  %s82_s0 = inlined_call_operand.vmem [shape: f32[1,128], index: 0, kind: input, shape index: {}]   ;;  %s83_s2 = inlined_call_operand.vmem [shape: f32[8,1], index: 2, kind: input, shape index: {}]   ;;  %s84_s3 = inlined_call_operand.vmem [shape: f32[8,128], index: 3, kind: output, shape index: {}]  }
   0x1   :  { %44 = vset.pattern.permute.xlu0 %v48_v0  ;;  %v15_v1 = vld [vmem:[%s81_s1] sm:$0xff] }
   0x2   :  { %18 = vperm.xlu0 %44, %v15_v1   ;;  %v25_v2 = vld [vmem:[%s83_s2] sm:$0xff]  ;;  %v33_v9 = vshrl.u32 %v32_v7, 7 }
   0x3   :  { %v45_v4 = vld [vmem:[%s82_s0] ss:$0 sm:$0xff] }
   0x4   :  { %vm34_vm0 = vcmp.lt.s32.totalorder %v33_v9, 2 }
   0xa   :  { %28 = vperm.xlu0 %44, %v25_v2  }
  0x74   :  { %v19_v3 = vpop.permute.xlu0 %18 }
  0x75   :  { %v24_v5 = vmul.f32 %v45_v4, %v19_v3 }
  0x7c   :  { %v29_v6 = vpop.permute.xlu0 %28 }
  0x7d   :  { %v31_v8 = vadd.f32 %v29_v6, %v24_v5 }
  0x7f   :  { %46 = vtanh.f32 %v31_v8 }
  0x85   :  { %v47_v10 = vpop.eup %46 }
  0x86   :  { %v36_v11 = vmul.f32 3.1415927, %v47_v10 }
  0x88   :  { %v37_v12 = vsel %vm34_vm0, %v36_v11, %v31_v8 }
  0x89   :  { %38 = vst [vmem:[%s84_s3] sm:$0xff] %v37_v12 }

</bundles_post_ra>
